<compile_context>
chip_gen: v7x
topology: tpu7x:2x2x1
jax: 0.10.0
libtpu: 0.0.40
codegen_flags: <defaults>
</compile_context>

<pallas_src>
import jax
import jax.numpy as jnp
from jax.experimental import pallas as pl
from jax.experimental.pallas import tpu as pltpu

# Small, forward-consistent hyperparameters (original: L=2e6, W=500).
B = 2              # batch
W = 128            # window_size (Conv1d kernel == stride -> non-overlapping)
NW = 16            # input_length // window_size (== MaxPool1d kernel size)
L = W * NW         # input_length
EMB = 8            # embedding dim (first 4 channels -> conv_1, last 4 -> conv_2)
CH = 4             # channels per conv branch
HID = 128          # conv output channels == fc hidden width
K1 = W * CH        # per-branch contraction dim (tap-major)


def malconv_kernel(x1_ref, x2_ref, wc1_ref, wc2_ref, slab_ref, out_ref):
    """One batch row per grid step.

    x1_ref/x2_ref : (NW, K1)  bf16   non-overlapping windows, branch 1 / 2
    wc1_ref/wc2_ref: (K1, HID) bf16  per-branch conv weights (tap-major)
    slab_ref      : (8, HID)  f32    row0=b1, row1=b2, row2=v(fc fold), row3=c
    out_ref       : (8, HID)  f32    logit broadcast (lane-dense, 8 sublanes)
    """
    # Two MXU matmuls (no structural zeros), bf16 operands, f32 accumulation.
    s1 = jnp.dot(x1_ref[...], wc1_ref[...],
                 preferred_element_type=jnp.float32) + slab_ref[0:1, :]   # (NW, HID)
    s2 = jnp.dot(x2_ref[...], wc2_ref[...],
                 preferred_element_type=jnp.float32) + slab_ref[1:2, :]   # (NW, HID)

    # Gated convolution; sigmoid via a single EUP tanh push.
    gate = 0.5 * jnp.tanh(0.5 * s2) + 0.5
    gated = s1 * gate                                                     # (NW, HID)

    # Global max-pool over the NW windows (MaxPool1d(NW) + view(-1, 128)).
    pooled = jnp.max(gated, axis=0, keepdims=True)                        # (1, HID)

    # Folded fc_1 -> fc_2: logit = pooled @ (fc1_w.T @ fc2_w) + (fc1_b.fc2_w + fc2_b)
    logit = jnp.sum(pooled * slab_ref[2:3, :], axis=-1, keepdims=True)    # (1, 1)

    # Lane-dense, 8-sublane broadcast writeback (unmasked vst); +c via slab row 3.
    out_ref[...] = jnp.broadcast_to(logit, (8, HID)) + slab_ref[3:4, :]


def pack_params(params):
    """One-time weight packing (param-only; hoisted out of the per-call path)."""
    emb_tbl, w1, b1, w2, b2, fc1_w, fc1_b, fc2_w, fc2_b = params

    emb_bf16 = emb_tbl.astype(jnp.bfloat16)                               # (257, EMB)

    # wc[k*CH + c, o] = w[o, c, k]  -> windows reshape to (NW, W*CH) is tap-major.
    wc1 = jnp.transpose(w1, (2, 1, 0)).reshape(K1, HID).astype(jnp.bfloat16)
    wc2 = jnp.transpose(w2, (2, 1, 0)).reshape(K1, HID).astype(jnp.bfloat16)

    # fc_1 / fc_2 fold (valid: no activation between them in the reference).
    v = fc1_w.T @ fc2_w[0]                                                # (HID,)
    c = jnp.dot(fc1_b, fc2_w[0]) + fc2_b[0]                               # scalar

    slab = jnp.zeros((8, HID), jnp.float32)
    slab = slab.at[0].set(b1).at[1].set(b2).at[2].set(v)
    slab = slab.at[3].set(jnp.full((HID,), c, jnp.float32))
    return emb_bf16, wc1, wc2, slab


@jax.jit
def malconv_forward(x_idx, emb_bf16, wc1, wc2, slab):
    # Embedding gather (bf16 table) and pure-reshape windowing; the channel
    # split feeds the two conv branches with no transpose of the activation.
    emb = jnp.take(emb_bf16, x_idx, axis=0)                               # (B, L, EMB)
    e4 = emb.reshape(B, NW, W, EMB)
    x1 = e4[..., :CH].reshape(B, NW, K1)                                  # branch 1
    x2 = e4[..., CH:].reshape(B, NW, K1)                                  # branch 2

    out = pl.pallas_call(
        malconv_kernel,
        out_shape=jax.ShapeDtypeStruct((B, 8, HID), jnp.float32),
        grid=(B,),
        in_specs=[
            pl.BlockSpec((None, NW, K1), lambda b: (b, 0, 0)),            # x1
            pl.BlockSpec((None, NW, K1), lambda b: (b, 0, 0)),            # x2
            pl.BlockSpec((K1, HID), lambda b: (0, 0)),                    # wc1
            pl.BlockSpec((K1, HID), lambda b: (0, 0)),                    # wc2
            pl.BlockSpec((8, HID), lambda b: (0, 0)),                     # slab
        ],
        out_specs=pl.BlockSpec((None, 8, HID), lambda b: (b, 0, 0)),
        compiler_params=pltpu.CompilerParams(
            dimension_semantics=("parallel",)),
    )(x1, x2, wc1, wc2, slab)

    return out[:, 0, :1]                                                  # (B, 1)


def ref_forward(x_idx, params):
    """Independent pure-JAX (f32) reference using lax.conv (unfused fc_1/fc_2)."""
    emb_tbl, w1, b1, w2, b2, fc1_w, fc1_b, fc2_w, fc2_b = params
    emb = jnp.take(emb_tbl, x_idx, axis=0)             # (B, L, EMB)
    xe = jnp.transpose(emb, (0, 2, 1))                 # (B, EMB, L)
    dn = ('NCH', 'OIH', 'NCH')
    c1 = jax.lax.conv_general_dilated(xe[:, :CH], w1, (W,), 'VALID',
                                      dimension_numbers=dn) + b1[None, :, None]
    c2 = jax.lax.conv_general_dilated(xe[:, CH:], w2, (W,), 'VALID',
                                      dimension_numbers=dn) + b2[None, :, None]
    g = c1 * jax.nn.sigmoid(c2)                        # (B, HID, NW)
    pooled = jnp.max(g, axis=-1)                       # (B, HID)  MaxPool1d(NW)
    h1 = pooled @ fc1_w.T + fc1_b
    return h1 @ fc2_w.T + fc2_b                        # (B, 1)


if __name__ == "__main__":
    key = jax.random.PRNGKey(0)
    ks = jax.random.split(key, 10)

    # Deterministic synthetic parameters (shapes from MalConv.__init__).
    emb_tbl = 0.1 * jax.random.normal(ks[0], (257, EMB), jnp.float32)
    emb_tbl = emb_tbl.at[0].set(0.0)                   # padding_idx=0
    w1 = 0.05 * jax.random.normal(ks[1], (HID, CH, W), jnp.float32)
    b1 = 0.05 * jax.random.normal(ks[2], (HID,), jnp.float32)
    w2 = 0.05 * jax.random.normal(ks[3], (HID, CH, W), jnp.float32)
    b2 = 0.05 * jax.random.normal(ks[4], (HID,), jnp.float32)
    fc1_w = 0.05 * jax.random.normal(ks[5], (HID, HID), jnp.float32)
    fc1_b = 0.05 * jax.random.normal(ks[6], (HID,), jnp.float32)
    fc2_w = 0.05 * jax.random.normal(ks[7], (1, HID), jnp.float32)
    fc2_b = 0.05 * jax.random.normal(ks[8], (1,), jnp.float32)
    params = (emb_tbl, w1, b1, w2, b2, fc1_w, fc1_b, fc2_w, fc2_b)

    # Input byte sequence (the module calls x.long(); values in [0, 257)).
    x = jax.random.randint(ks[9], (B, L), 0, 257, dtype=jnp.int32)

    # One-time packing; per-call path is a single jitted program.
    packed = jax.block_until_ready(pack_params(params))

    out = malconv_forward(x, *packed)
    jax.block_until_ready(out)

    ref = ref_forward(x, params)
    assert out.shape == (B, 1), out.shape
    # bf16 matmul operands (f32 accumulate) -> loosened tolerance vs f32 reference.
    assert jnp.allclose(out, ref, atol=5e-3, rtol=5e-3), (out, ref)
    print("KERNEL_OK")
</pallas_src>

<mosaic_0001>
module attributes {stable_mosaic.version = 11 : i64} {
  func.func @malconv_kernel(%arg0: i32, %arg1: memref<1x16x512xbf16, #tpu.memory_space<vmem>>, %arg2: memref<1x16x512xbf16, #tpu.memory_space<vmem>>, %arg3: memref<512x128xbf16, #tpu.memory_space<vmem>>, %arg4: memref<512x128xbf16, #tpu.memory_space<vmem>>, %arg5: memref<8x128xf32, #tpu.memory_space<vmem>>, %arg6: memref<1x8x128xf32, #tpu.memory_space<vmem>>) attributes {dimension_semantics = [#tpu.dimension_semantics<parallel>], iteration_bounds = array<i64: 2>, scalar_prefetch = 0 : i64, scratch_operands = 0 : i64, tpu.core_type = #tpu.core_type<tc>, window_params = [{transform_indices = @transform_0, window_bounds = array<i64: 1, 16, 512>}, {transform_indices = @transform_1, window_bounds = array<i64: 1, 16, 512>}, {pipeline_mode = #tpu.pipeline_mode<synchronous>, transform_indices = @transform_2, window_bounds = array<i64: 512, 128>}, {pipeline_mode = #tpu.pipeline_mode<synchronous>, transform_indices = @transform_3, window_bounds = array<i64: 512, 128>}, {pipeline_mode = #tpu.pipeline_mode<synchronous>, transform_indices = @transform_4, window_bounds = array<i64: 8, 128>}, {transform_indices = @transform_5, window_bounds = array<i64: 1, 8, 128>}]} {
    %c0 = arith.constant 0 : index
    %c0_0 = arith.constant 0 : index
    %c0_1 = arith.constant 0 : index
    %0 = vector.load %arg1[%c0, %c0_0, %c0_1] : memref<1x16x512xbf16, #tpu.memory_space<vmem>>, vector<1x16x512xbf16>
    %1 = vector.shape_cast %0 : vector<1x16x512xbf16> to vector<16x512xbf16>
    %c0_2 = arith.constant 0 : index
    %c0_3 = arith.constant 0 : index
    %2 = vector.load %arg3[%c0_2, %c0_3] : memref<512x128xbf16, #tpu.memory_space<vmem>>, vector<512x128xbf16>
    %cst = arith.constant dense<0.000000e+00> : vector<16x128xf32>
    %3 = tpu.matmul %1, %2, %cst {dimension_numbers = #tpu.dot_dimension_numbers<[1], [0], [0], [1], [0, 0, 1, 1], [], []>} : vector<16x512xbf16>, vector<512x128xbf16>, vector<16x128xf32> -> vector<16x128xf32>
    %c0_4 = arith.constant 0 : index
    %c0_5 = arith.constant 0 : index
    %4 = vector.load %arg5[%c0_4, %c0_5] : memref<8x128xf32, #tpu.memory_space<vmem>>, vector<1x128xf32>
    %5 = vector.broadcast %4 : vector<1x128xf32> to vector<16x128xf32>
    %6 = arith.addf %3, %5 : vector<16x128xf32>
    %c0_6 = arith.constant 0 : index
    %c0_7 = arith.constant 0 : index
    %c0_8 = arith.constant 0 : index
    %7 = vector.load %arg2[%c0_6, %c0_7, %c0_8] : memref<1x16x512xbf16, #tpu.memory_space<vmem>>, vector<1x16x512xbf16>
    %8 = vector.shape_cast %7 : vector<1x16x512xbf16> to vector<16x512xbf16>
    %c0_9 = arith.constant 0 : index
    %c0_10 = arith.constant 0 : index
    %9 = vector.load %arg4[%c0_9, %c0_10] : memref<512x128xbf16, #tpu.memory_space<vmem>>, vector<512x128xbf16>
    %cst_11 = arith.constant dense<0.000000e+00> : vector<16x128xf32>
    %10 = tpu.matmul %8, %9, %cst_11 {dimension_numbers = #tpu.dot_dimension_numbers<[1], [0], [0], [1], [0, 0, 1, 1], [], []>} : vector<16x512xbf16>, vector<512x128xbf16>, vector<16x128xf32> -> vector<16x128xf32>
    %c1 = arith.constant 1 : index
    %c0_12 = arith.constant 0 : index
    %11 = vector.load %arg5[%c1, %c0_12] : memref<8x128xf32, #tpu.memory_space<vmem>>, vector<1x128xf32>
    %12 = vector.broadcast %11 : vector<1x128xf32> to vector<16x128xf32>
    %13 = arith.addf %10, %12 : vector<16x128xf32>
    %cst_13 = arith.constant 5.000000e-01 : f32
    %14 = vector.broadcast %cst_13 : f32 to vector<16x128xf32>
    %15 = arith.mulf %14, %13 : vector<16x128xf32>
    %16 = math.tanh %15 : vector<16x128xf32>
    %cst_14 = arith.constant 5.000000e-01 : f32
    %17 = vector.broadcast %cst_14 : f32 to vector<16x128xf32>
    %18 = arith.mulf %17, %16 : vector<16x128xf32>
    %cst_15 = arith.constant 5.000000e-01 : f32
    %19 = vector.broadcast %cst_15 : f32 to vector<16x128xf32>
    %20 = arith.addf %18, %19 : vector<16x128xf32>
    %21 = arith.mulf %6, %20 : vector<16x128xf32>
    %cst_16 = arith.constant dense<0xFF800000> : vector<128xf32>
    %22 = vector.multi_reduction <maximumf>, %21, %cst_16 [0] : vector<16x128xf32> to vector<128xf32>
    %23 = vector.shape_cast %22 : vector<128xf32> to vector<1x128xf32>
    %c2 = arith.constant 2 : index
    %c0_17 = arith.constant 0 : index
    %24 = vector.load %arg5[%c2, %c0_17] : memref<8x128xf32, #tpu.memory_space<vmem>>, vector<1x128xf32>
    %25 = arith.mulf %23, %24 : vector<1x128xf32>
    %cst_18 = arith.constant dense<0.000000e+00> : vector<1xf32>
    %26 = vector.multi_reduction <add>, %25, %cst_18 [1] : vector<1x128xf32> to vector<1xf32>
    %27 = vector.shape_cast %26 : vector<1xf32> to vector<1x1xf32>
    %28 = vector.shape_cast %27 : vector<1x1xf32> to vector<1x1xf32>
    %29 = vector.broadcast %28 : vector<1x1xf32> to vector<8x128xf32>
    %c3 = arith.constant 3 : index
    %c0_19 = arith.constant 0 : index
    %30 = vector.load %arg5[%c3, %c0_19] : memref<8x128xf32, #tpu.memory_space<vmem>>, vector<1x128xf32>
    %31 = vector.broadcast %30 : vector<1x128xf32> to vector<8x128xf32>
    %32 = arith.addf %29, %31 : vector<8x128xf32>
    %c0_20 = arith.constant 0 : index
    %c0_21 = arith.constant 0 : index
    %c0_22 = arith.constant 0 : index
    %33 = vector.load %arg6[%c0_20, %c0_21, %c0_22] : memref<1x8x128xf32, #tpu.memory_space<vmem>>, vector<1x8x128xf32>
    %34 = vector.shape_cast %33 : vector<1x8x128xf32> to vector<8x128xf32>
    %35 = vector.shape_cast %32 : vector<8x128xf32> to vector<1x8x128xf32>
    tpu.vector_store %arg6[%c0_20, %c0_21, %c0_22], %35 {strides = array<i32>} : memref<1x8x128xf32, #tpu.memory_space<vmem>>, vector<1x8x128xf32>,
    return
  }
  func.func @transform_0(%arg0: i32) -> (i32, i32, i32) {
    %c0_i32 = arith.constant 0 : i32
    %c0_i32_0 = arith.constant 0 : i32
    %c0_i32_1 = arith.constant 0 : i32
    return %arg0, %c0_i32, %c0_i32_0 : i32, i32, i32
  }
  func.func @transform_1(%arg0: i32) -> (i32, i32, i32) {
    %c0_i32 = arith.constant 0 : i32
    %c0_i32_0 = arith.constant 0 : i32
    %c0_i32_1 = arith.constant 0 : i32
    return %arg0, %c0_i32, %c0_i32_0 : i32, i32, i32
  }
  func.func @transform_2(%arg0: i32) -> (i32, i32) {
    %c0_i32 = arith.constant 0 : i32
    %c0_i32_0 = arith.constant 0 : i32
    %c0_i32_1 = arith.constant 0 : i32
    return %c0_i32, %c0_i32_0 : i32, i32
  }
  func.func @transform_3(%arg0: i32) -> (i32, i32) {
    %c0_i32 = arith.constant 0 : i32
    %c0_i32_0 = arith.constant 0 : i32
    %c0_i32_1 = arith.constant 0 : i32
    return %c0_i32, %c0_i32_0 : i32, i32
  }
  func.func @transform_4(%arg0: i32) -> (i32, i32) {
    %c0_i32 = arith.constant 0 : i32
    %c0_i32_0 = arith.constant 0 : i32
    %c0_i32_1 = arith.constant 0 : i32
    return %c0_i32, %c0_i32_0 : i32, i32
  }
  func.func @transform_5(%arg0: i32) -> (i32, i32, i32) {
    %c0_i32 = arith.constant 0 : i32
    %c0_i32_0 = arith.constant 0 : i32
    %c0_i32_1 = arith.constant 0 : i32
    return %arg0, %c0_i32, %c0_i32_0 : i32, i32, i32
  }
}

</mosaic_0001>

<bundles_post_ra>
// kernel: malconv_forward.1
= control target key start
LH: loop header
LB: loop body
LE: loop exit
PB: predicated region body
PF: predicated region fallthrough
CT: control target
= control target key end

     0   :  { %s1380_s18 = smov 0   ;;  %s1616_s0 = inlined_call_operand.vmem [shape: bf16[2,16,512], index: 0, kind: input, shape index: {}]   ;;  %s1617_s1 = inlined_call_operand.vmem [shape: bf16[2,16,512], index: 1, kind: input, shape index: {}]   ;;  %s1618_s2 = inlined_call_operand.vmem [shape: bf16[512,128], index: 2, kind: input, shape index: {}]   ;;  %s1619_s3 = inlined_call_operand.vmem [shape: bf16[512,128], index: 3, kind: input, shape index: {}]   ;;  %s1620_s4 = inlined_call_operand.vmem [shape: f32[8,128], index: 4, kind: input, shape index: {}]   ;;  %s1621_s5 = inlined_call_operand.vmem [shape: f32[2,8,128], index: 5, kind: output, shape index: {}]  }
   0x1 LB: > { %s1077_s19 = sadd.s32 4294967295, %s1348_s18   ;;  %p1081_p0 = scmp.ge.s32.totalorder %s1348_s18, 1  ;;  %s1348_s18 = sphi %s1380_s18, %s15_s18  }
   0x2   : > { %p197_p1 = scmp.lt.s32.totalorder %s1348_s18, 3 }
   0x4   : > { %p198_p2 = pnand %p1081_p0, %p197_p1 }
   0x5   : > { %v1262_v0 = vld [vmem:[%s1618_s2 + $0x40] sm:$0xff] (!%p198_p2)   ;;  %v1266_v4 = vld [vmem:[%s1618_s2 + $0x48] sm:$0xff] (!%p198_p2)   ;;  %v1270_v8 = vld [vmem:[%s1618_s2 + $0x50] sm:$0xff] (!%p198_p2)   ;;  %p229_p3 = scmp.lt.s32.totalorder (!%p198_p2), %s1077_s19, 1  ;;  %vm997_vm0 = vcmask (!%p198_p2), 1040384  }
   0x6   : > { %201 = sbr.rel (%p198_p2) target bundleno = 475 (0x1db), region = 40  ;;  %v1263_v1 = vld [vmem:[%s1618_s2 + $0xc0] sm:$0xff] (!%p198_p2)   ;;  %1166 = vmatprep.subr.bf16.mxu0 (!%p198_p2), %v1262_v0  ;;  %v1267_v5 = vld [vmem:[%s1618_s2 + $0xc8] sm:$0xff] (!%p198_p2)   ;;  %v1271_v9 = vld [vmem:[%s1618_s2 + $0xd0] sm:$0xff] (!%p198_p2)  }
   0x7   : > { %v1264_v2 = vld [vmem:[%s1618_s2] sm:$0xff] (!%p198_p2)   ;;  %1188 = vmatprep.subr.bf16.mxu1 (!%p198_p2), %v1263_v1  ;;  %v1268_v6 = vld [vmem:[%s1618_s2 + $0x8] sm:$0xff] (!%p198_p2)   ;;  %v1272_v10 = vld [vmem:[%s1618_s2 + $0x10] sm:$0xff] (!%p198_p2)  }
   0x8   : > { %v1265_v3 = vld [vmem:[%s1618_s2 + $0x80] sm:$0xff] (!%p198_p2)   ;;  %1167 = vmatpush3.bf16.msra.mxu0 (!%p198_p2), %v1264_v2  ;;  %v1269_v7 = vld [vmem:[%s1618_s2 + $0x88] sm:$0xff] (!%p198_p2)   ;;  %v1273_v11 = vld [vmem:[%s1618_s2 + $0x90] sm:$0xff] (!%p198_p2)  }
   0x9   : > { %1189 = vmatpush3.bf16.msra.mxu1 (!%p198_p2), %v1265_v3  ;;  %1168 = vmatprep.subr.bf16.mxu0 (!%p198_p2), %v1266_v4  ;;  %v1274_v12 = vld [vmem:[%s1618_s2 + $0x58] sm:$0xff] (!%p198_p2)   ;;  %v1278_v16 = vld [vmem:[%s1618_s2 + $0x60] sm:$0xff] (!%p198_p2)   ;;  %v1282_v20 = vld [vmem:[%s1618_s2 + $0x68] sm:$0xff] (!%p198_p2)  }
   0xa   : > { %1190 = vmatprep.subr.bf16.mxu1 (!%p198_p2), %v1267_v5  ;;  %v1275_v13 = vld [vmem:[%s1618_s2 + $0xd8] sm:$0xff] (!%p198_p2)   ;;  %v1279_v17 = vld [vmem:[%s1618_s2 + $0xe0] sm:$0xff] (!%p198_p2)   ;;  %v1283_v21 = vld [vmem:[%s1618_s2 + $0xe8] sm:$0xff] (!%p198_p2)  }
   0xb   : > { %v1276_v14 = vld [vmem:[%s1618_s2 + $0x18] sm:$0xff] (!%p198_p2)   ;;  %v1280_v18 = vld [vmem:[%s1618_s2 + $0x20] sm:$0xff] (!%p198_p2)   ;;  %v1284_v22 = vld [vmem:[%s1618_s2 + $0x28] sm:$0xff] (!%p198_p2)  }
   0xc   : > { %1169 = vmatpush3.bf16.msra.mxu0 (!%p198_p2), %v1268_v6  ;;  %v1277_v15 = vld [vmem:[%s1618_s2 + $0x98] sm:$0xff] (!%p198_p2)   ;;  %v1281_v19 = vld [vmem:[%s1618_s2 + $0xa0] sm:$0xff] (!%p198_p2)   ;;  %v1285_v23 = vld [vmem:[%s1618_s2 + $0xa8] sm:$0xff] (!%p198_p2)  }
   0xd   : > { %1191 = vmatpush3.bf16.msra.mxu1 %v1269_v7  ;;  %1170 = vmatprep.subr.bf16.mxu0 %v1270_v8  ;;  %s1623_s19 = smov (!%p229_p3, %s1077_s19), 1  ;;  %v1286_v24 = vld [vmem:[%s1618_s2 + $0x70] sm:$0xff]   ;;  %v1290_v28 = vld [vmem:[%s1618_s2 + $0x78] sm:$0xff]   ;;  %v1300_v36 = vld [vmem:[%s1619_s3 + $0x40] sm:$0xff]  }
   0xe   : > { %1192 = vmatprep.subr.bf16.mxu1 %v1271_v9  ;;  %v1287_v25 = vld [vmem:[%s1618_s2 + $0xf0] sm:$0xff]   ;;  %s1164_s28 = sshll.u32 %s1623_s19, 5  ;;  %v1291_v29 = vld [vmem:[%s1618_s2 + $0xf8] sm:$0xff]   ;;  %v1301_v37 = vld [vmem:[%s1619_s3 + $0xc0] sm:$0xff]   ;;  %s1086_s25 = sshll.u32 %s1623_s19, 3 }
   0xf   : > { %v1288_v26 = vld [vmem:[%s1618_s2 + $0x30] sm:$0xff]   ;;  %s233_s12 = scalar_lea.vmem %s1616_s0, %s1164_s28  ;;  %v1292_v30 = vld [vmem:[%s1618_s2 + $0x38] sm:$0xff]   ;;  %v1302_v38 = vld [vmem:[%s1619_s3] sm:$0xff]   ;;  %s238_s11 = scalar_lea.vmem %s1617_s1, %s1164_s28 }
  0x10   : > { %1171 = vmatpush3.bf16.msra.mxu0 %v1272_v10  ;;  %v1289_v27 = vld [vmem:[%s1618_s2 + $0xb0] sm:$0xff]   ;;  %v1293_v31 = vld [vmem:[%s1618_s2 + $0xb8] sm:$0xff]   ;;  %v1303_v39 = vld [vmem:[%s1619_s3 + $0x80] sm:$0xff]   ;;  %s242_s6 = scalar_lea.vmem %s1621_s5, %s1086_s25 }
  0x11   : > { %1193 = vmatpush3.bf16.msra.mxu1 %v1273_v11  ;;  %1172 = vmatprep.subr.bf16.mxu0 %v1274_v12  ;;  %v1294_v32 = vld [vmem:[%s233_s12] ss:$16 sps:$4 sm:$0xff]   ;;  %v1296_v33 = vld [vmem:[%s233_s12 + $0x4] ss:$16 sps:$4 sm:$0xff]   ;;  %v1297_v34 = vld [vmem:[%s233_s12 + $0x8] ss:$16 sps:$4 sm:$0xff]  }
  0x12   : > { %1194 = vmatprep.subr.bf16.mxu1 %v1275_v13  ;;  %v1299_v35 = vld [vmem:[%s233_s12 + $0xc] ss:$16 sps:$4 sm:$0xff]   ;;  %561 = vmatprep.mubr.bf16.mxu0 %v1296_v33  ;;  %v1308_v44 = vld [vmem:[%s1619_s3 + $0x50] sm:$0xff]   ;;  %v1316_v52 = vld [vmem:[%s1619_s3 + $0x60] sm:$0xff]  }
  0x13   : > { %602 = vmatprep.mubr.bf16.mxu1 %v1299_v35  ;;  %v1304_v40 = vld [vmem:[%s1619_s3 + $0x48] sm:$0xff]   ;;  %v1309_v45 = vld [vmem:[%s1619_s3 + $0xd0] sm:$0xff]   ;;  %v1312_v48 = vld [vmem:[%s1619_s3 + $0x58] sm:$0xff]  }
  0x14   : > { %1173 = vmatpush3.bf16.msra.mxu0 %v1276_v14  ;;  %v1305_v41 = vld [vmem:[%s1619_s3 + $0xc8] sm:$0xff]   ;;  %v1310_v46 = vld [vmem:[%s1619_s3 + $0x10] sm:$0xff]   ;;  %v1313_v49 = vld [vmem:[%s1619_s3 + $0xd8] sm:$0xff]  }
  0x15   : > { %1195 = vmatpush3.bf16.msra.mxu1 %v1277_v15  ;;  %1174 = vmatprep.subr.bf16.mxu0 %v1278_v16  ;;  %v1306_v42 = vld [vmem:[%s1619_s3 + $0x8] sm:$0xff]   ;;  %v1311_v47 = vld [vmem:[%s1619_s3 + $0x90] sm:$0xff]   ;;  %v1314_v50 = vld [vmem:[%s1619_s3 + $0x18] sm:$0xff]  }
  0x16   : > { %1196 = vmatprep.subr.bf16.mxu1 %v1279_v17  ;;  %v1307_v43 = vld [vmem:[%s1619_s3 + $0x88] sm:$0xff]   ;;  %v1315_v51 = vld [vmem:[%s1619_s3 + $0x98] sm:$0xff]   ;;  %v1317_v53 = vld [vmem:[%s1619_s3 + $0xe0] sm:$0xff]  }
  0x17   : > { %v1318_v54 = vld [vmem:[%s1619_s3 + $0x20] sm:$0xff]   ;;  %v1320_v56 = vld [vmem:[%s1619_s3 + $0x68] sm:$0xff]   ;;  %v1324_v60 = vld [vmem:[%s1619_s3 + $0x70] sm:$0xff]  }
  0x18   : > { %1175 = vmatpush3.bf16.msra.mxu0 %v1280_v18  ;;  %v1319_v55 = vld [vmem:[%s1619_s3 + $0xa0] sm:$0xff]   ;;  %v1321_v57 = vld [vmem:[%s1619_s3 + $0xe8] sm:$0xff]   ;;  %v1325_v61 = vld [vmem:[%s1619_s3 + $0xf0] sm:$0xff]  }
  0x19   : > { %1197 = vmatpush3.bf16.msra.mxu1 %v1281_v19  ;;  %1176 = vmatprep.subr.bf16.mxu0 %v1282_v20  ;;  %v1322_v58 = vld [vmem:[%s1619_s3 + $0x28] sm:$0xff]   ;;  %v1326_v62 = vld [vmem:[%s1619_s3 + $0x30] sm:$0xff]   ;;  %v1328_v0 = vld [vmem:[%s1619_s3 + $0x78] sm:$0xff]  }
  0x1a   : > { %1198 = vmatprep.subr.bf16.mxu1 %v1283_v21  ;;  %v1323_v59 = vld [vmem:[%s1619_s3 + $0xa8] sm:$0xff]   ;;  %v1327_v63 = vld [vmem:[%s1619_s3 + $0xb0] sm:$0xff]   ;;  %v1329_v1 = vld [vmem:[%s1619_s3 + $0xf8] sm:$0xff]  }
  0x1b   : > { %v1330_v2 = vld [vmem:[%s1619_s3 + $0x38] sm:$0xff]   ;;  %v1332_v4 = vld [vmem:[%s238_s11] ss:$16 sps:$4 sm:$0xff]   ;;  %v1334_v5 = vld [vmem:[%s238_s11 + $0x4] ss:$16 sps:$4 sm:$0xff]  }
  0x1c   : > { %1177 = vmatpush3.bf16.msra.mxu0 %v1284_v22  ;;  %v1331_v3 = vld [vmem:[%s1619_s3 + $0xb8] sm:$0xff]   ;;  %v1087_v10 = vld [vmem:[%s1620_s4] ss:$0 sm:$0xff] }
  0x1d   : > { %1199 = vmatpush3.bf16.msra.mxu1 %v1285_v23  ;;  %1178 = vmatprep.subr.bf16.mxu0 %v1286_v24  ;;  %v1335_v6 = vld [vmem:[%s238_s11 + $0x8] ss:$16 sps:$4 sm:$0xff]   ;;  %v1337_v7 = vld [vmem:[%s238_s11 + $0xc] ss:$16 sps:$4 sm:$0xff]  }
  0x1e   : > { %1200 = vmatprep.subr.bf16.mxu1 %v1287_v25 }
  0x20   : > { %1179 = vmatpush3.bf16.msra.mxu0 %v1288_v26  ;;  %v1124_v26 = vld [vmem:[%s1620_s4 + $0x1] ss:$0 sm:$0xff] }
  0x21   : > { %1201 = vmatpush3.bf16.msra.mxu1 %v1289_v27  ;;  %1180 = vmatprep.subr.bf16.mxu0 %v1290_v28 }
  0x22   : > { %1202 = vmatprep.subr.bf16.mxu1 %v1291_v29 }
  0x24   : > { %1181 = vmatpush3.bf16.msra.mxu0 %v1292_v30 }
  0x25   : > { %1203 = vmatpush3.bf16.msra.mxu1 %v1293_v31  ;;  %1210 = vmatprep.subr.bf16.mxu0 %v1300_v36 }
  0x26   : > { %1232 = vmatprep.subr.bf16.mxu1 %v1301_v37 }
  0x27   : > { %562 = vmatmul.mubr.bf16.vlgmr.msra.gmra.mrb[0].mxu0 %v1294_v32 }
  0x28   : > { %603 = vmatmul.mubr.bf16.vlgmr.msra.gmra.mrb[0].mxu1 %v1297_v34  ;;  %1211 = vmatpush3.bf16.msra.mxu0 %v1302_v38 }
  0x29   : > { %1233 = vmatpush3.bf16.msra.mxu1 %v1303_v39  ;;  %1212 = vmatprep.subr.bf16.mxu0 %v1304_v40 }
  0x2a   : > { %1234 = vmatprep.subr.bf16.mxu1 %v1305_v41  ;;  %928 = vmatprep.mubr.bf16.mxu0 %v1334_v5 }
  0x2b   : > { %969 = vmatprep.mubr.bf16.mxu1 %v1337_v7 }
  0x2c   : > { %1213 = vmatpush3.bf16.msra.mxu0 %v1306_v42 }
  0x2d   : > { %1235 = vmatpush3.bf16.msra.mxu1 %v1307_v43  ;;  %1214 = vmatprep.subr.bf16.mxu0 %v1308_v44 }
  0x2e   : > { %1236 = vmatprep.subr.bf16.mxu1 %v1309_v45 }
  0x30   : > { %1215 = vmatpush3.bf16.msra.mxu0 %v1310_v46 }
  0x31   : > { %1237 = vmatpush3.bf16.msra.mxu1 %v1311_v47  ;;  %1216 = vmatprep.subr.bf16.mxu0 %v1312_v48 }
  0x32   : > { %1238 = vmatprep.subr.bf16.mxu1 %v1313_v49 }
  0x34   : > { %1217 = vmatpush3.bf16.msra.mxu0 %v1314_v50 }
  0x35   : > { %1239 = vmatpush3.bf16.msra.mxu1 %v1315_v51  ;;  %1218 = vmatprep.subr.bf16.mxu0 %v1316_v52 }
  0x36   : > { %1240 = vmatprep.subr.bf16.mxu1 %v1317_v53 }
  0x38   : > { %1219 = vmatpush3.bf16.msra.mxu0 %v1318_v54 }
  0x39   : > { %1241 = vmatpush3.bf16.msra.mxu1 %v1319_v55  ;;  %1220 = vmatprep.subr.bf16.mxu0 %v1320_v56 }
  0x3a   : > { %1242 = vmatprep.subr.bf16.mxu1 %v1321_v57 }
  0x3c   : > { %1221 = vmatpush3.bf16.msra.mxu0 %v1322_v58  ;;  %v995_v58 = vld [vmem:[%s1620_s4 + $0x2] sm:$0x1] }
  0x3d   : > { %1243 = vmatpush3.bf16.msra.mxu1 %v1323_v59  ;;  %1222 = vmatprep.subr.bf16.mxu0 %v1324_v60 }
  0x3e   : > { %1244 = vmatprep.subr.bf16.mxu1 %v1325_v61 }
  0x40   : > { %1223 = vmatpush3.bf16.msra.mxu0 %v1326_v62  ;;  %v1001_v62 = vlaneseq }
  0x41   : > { %1245 = vmatpush3.bf16.msra.mxu1 %v1327_v63  ;;  %1224 = vmatprep.subr.bf16.mxu0 %v1328_v0 }
  0x42   : > { %1246 = vmatprep.subr.bf16.mxu1 %v1329_v1  ;;  %v1002_v63 = vshrl.u32 %v1001_v62, 7 }
  0x44   : > { %1225 = vmatpush3.bf16.msra.mxu0 %v1330_v2  ;;  %v1003_v0 = vsub.s32 0, %v1002_v63  ;;  %v1161_v2 = vld [vmem:[%s1620_s4 + $0x3] ss:$0 sm:$0xff] }
  0x45   : > { %1247 = vmatpush3.bf16.msra.mxu1 %v1331_v3 }
  0x47   : > { %929 = vmatmul.mubr.bf16.vlgmr.msra.gmra.mrb[4].mxu0 %v1332_v4 }
  0x48   : > { %970 = vmatmul.mubr.bf16.vlgmr.msra.gmra.mrb[4].mxu1 %v1335_v6 }
  0xfa   : > { %v1182_v8 = vpop.f32.mrb[0].mxu0 }
  0xfb   : > { %v1204_v9 = vpop.f32.mrb[0].mxu1  ;;  %v1183_v11 = vpop.f32.mrb[1].mxu0 }
  0xfc   : > { %v1184_v12 = vadd.f32 %v1183_v11, %v1182_v8  ;;  %v1205_v13 = vpop.f32.mrb[1].mxu1  ;;  %v1185_v14 = vpop.f32.mrb[2].mxu0 }
  0xfd   : > { %v1206_v15 = vadd.f32 %v1205_v13, %v1204_v9  ;;  %v1207_v16 = vpop.f32.mrb[2].mxu1  ;;  %v1186_v17 = vpop.f32.mrb[3].mxu0 }
  0xfe   : > { %v564_v18 = vadd.f32 %v1184_v12, %v1087_v10  ;;  %v1187_v19 = vadd.f32 %v1186_v17, %v1185_v14  ;;  %v1208_v20 = vpop.f32.mrb[3].mxu1 }
  0xff   : > { %v1209_v21 = vadd.f32 %v1208_v20, %v1207_v16 }
 0x100   : > { %v605_v22 = vadd.f32 %v1206_v15, %v564_v18  ;;  %v567_v23 = vadd.f32 %v1187_v19, %v1087_v10 }
 0x102   : > { %v608_v24 = vadd.f32 %v1209_v21, %v567_v23 }
 0x11a   : > { %v1226_v25 = vpop.f32.mrb[4].mxu0 }
 0x11b   : > { %v1227_v27 = vpop.f32.mrb[5].mxu0  ;;  %v1248_v28 = vpop.f32.mrb[4].mxu1 }
 0x11c   : > { %v1228_v29 = vadd.f32 %v1227_v27, %v1226_v25  ;;  %v1229_v30 = vpop.f32.mrb[6].mxu0  ;;  %v1249_v31 = vpop.f32.mrb[5].mxu1 }
 0x11d   : > { %v1230_v32 = vpop.f32.mrb[7].mxu0  ;;  %v1250_v34 = vadd.f32 %v1249_v31, %v1248_v28  ;;  %v1251_v35 = vpop.f32.mrb[6].mxu1 }
 0x11e   : > { %v931_v33 = vadd.f32 %v1228_v29, %v1124_v26  ;;  %v1231_v36 = vadd.f32 %v1230_v32, %v1229_v30  ;;  %v1252_v37 = vpop.f32.mrb[7].mxu1 }
 0x11f   : > { %v1253_v40 = vadd.f32 %v1252_v37, %v1251_v35 }
 0x120   : > { %v972_v38 = vadd.f32 %v1250_v34, %v931_v33  ;;  %v934_v39 = vadd.f32 %v1231_v36, %v1124_v26 }
 0x122   : > { %v978_v41 = vmul.f32 0.5, %v972_v38  ;;  %v975_v42 = vadd.f32 %v1253_v40, %v934_v39 }
 0x124   : > { %1338 = vtanh.f32 %v978_v41  ;;  %v979_v43 = vmul.f32 0.5, %v975_v42 }
 0x126   : > { %1340 = vtanh.f32 %v979_v43 }
 0x12e   : > { %v1339_v44 = vpop.eup %1338 }
 0x12f   : > { %v982_v45 = vmul.f32 0.5, %v1339_v44 }
 0x130   : > { %v1341_v46 = vpop.eup %1340 }
 0x131   : > { %v984_v47 = vadd.f32 0.5, %v982_v45  ;;  %v983_v48 = vmul.f32 0.5, %v1341_v46 }
 0x133   : > { %v986_v49 = vmul.f32 %v984_v47, %v605_v22  ;;  %v985_v50 = vadd.f32 0.5, %v983_v48 }
 0x135   : > { %v987_v51 = vmul.f32 %v985_v50, %v608_v24 }
 0x137   : > { %v988_v52 = vmax.f32 %v986_v49, %v987_v51 }
 0x139   : > { %v989_v53 = vrot.slane %v988_v52, 4 }
 0x13b   : > { %v990_v54 = vmax.f32 %v988_v52, %v989_v53 }
 0x13d   : > { %v991_v55 = vrot.slane %v990_v54, 2 }
 0x13f   : > { %v992_v56 = vmax.f32 %v990_v54, %v991_v55 }
 0x141   : > { %v993_v57 = vrot.slane %v992_v56, 1 }
 0x143   : > { %v994_v59 = vmax.f32 %v992_v56, %v993_v57 }
 0x145   : > { %v996_v60 = vmul.f32 %v995_v58, %v994_v59 }
 0x147   : > { %v998_v61 = vsel %vm997_vm0, %v996_v60, 0.0 }
 0x148   : > { %999 = vadd.xlane.f32.xlu0 %v998_v61 }
 0x1d5   : > { %v1000_v1 = vpop.xlane.xlu0 %999 }
 0x1d6   : > { %v1004_v3 = vrot.slane %v1000_v1, %v1003_v0 }
 0x1d8   : > { %v1010_v4 = vadd.f32 %v1161_v2, %v1004_v3 }
 0x1da   : > { %1011 = vst [vmem:[%s242_s6] sm:$0xff] %v1010_v4 }
 0x1db PF: > { %s15_s18 = sadd.s32 1, %s1348_s18  }
 0x1dc   : > { %p12_p4 = scmp.ge.s32.totalorder %s15_s18, 4  }
 0x1de   :  { %14 = sbr.rel (!%p12_p4) target bundleno = 1 (0x1), region = 73 }

</bundles_post_ra>
